<compile_context>
chip_gen: v5e
topology: v5e:2x2
jax: 0.10.0
libtpu: 0.0.40
codegen_flags: <defaults>
</compile_context>

<pallas_src>
import jax
import jax.numpy as jnp
from jax.experimental import pallas as pl
from jax.experimental.pallas import tpu as pltpu


# --------------------------------------------------------------------------
# Fused FAM kernel: one batch element per grid step, everything in VMEM.
# Layout is channel-major: activations are (C, HW) with HW on the lane dim.
# --------------------------------------------------------------------------
def _fam_kernel(a_ref, b_ref,               # (1, C1, HW), (1, C2, HW)   bf16
                w1a_ref, w1b_ref,            # (Cout, C1), (Cout, C2)     bf16
                s1_ref, b1_ref,              # (Cout, 1)  folded BN0 scale/bias
                wc1_ref, bc1_ref,            # (Cout, Cout) bf16, (Cout, 1) bias
                wc2_ref, s2_ref, b2_ref,     # conv2 wT bf16, folded (bn2∘conv2) scale/bias
                o_ref):                      # (1, Cout, HW)
    a = a_ref[0]                             # (C1, HW) bf16
    b = b_ref[0]                             # (C2, HW) bf16

    # 1x1 conv over the (virtual) channel concat == sum of two MXU dots (f32 acc).
    pre = (jnp.dot(w1a_ref[...], a, preferred_element_type=jnp.float32)
           + jnp.dot(w1b_ref[...], b, preferred_element_type=jnp.float32))   # (Cout, HW)
    # Fused eval-mode BatchNorm + ReLU epilogue (f32, lane-broadcast of a column).
    feature = jnp.maximum(pre * s1_ref[...] + b1_ref[...], 0.0)              # (Cout, HW)

    # Per-channel global avg & max of `feature` in a single pass (XLU reductions).
    sum_f = jnp.sum(feature, axis=-1, keepdims=True)                         # (Cout, 1)
    max_f = jnp.max(feature, axis=-1, keepdims=True)                         # (Cout, 1)

    # Gate 1: sigmoid(relu(conv1(avgpool(feature)))).
    inv_hw = 1.0 / float(feature.shape[-1])
    avg = (sum_f * inv_hw).astype(jnp.bfloat16)
    z1 = jnp.dot(wc1_ref[...], avg, preferred_element_type=jnp.float32) + bc1_ref[...]
    g1 = 1.0 / (1.0 + jnp.exp(-jnp.maximum(z1, 0.0)))                        # (Cout, 1)

    # Gate 2: sigmoid(bn2(conv2(maxpool(feature * g1)))).
    # Exact rewrite: g1 = sigmoid(relu(.)) is strictly positive and per-channel, so
    # maxpool(feature * g1) == g1 * maxpool(feature).  (Invariant: the relu inside
    # gate 1 keeps g1 > 0 — do not remove it without revisiting this rewrite.)
    mx = (max_f * g1).astype(jnp.bfloat16)
    z2 = (jnp.dot(wc2_ref[...], mx, preferred_element_type=jnp.float32)
          * s2_ref[...] + b2_ref[...])
    g2 = 1.0 / (1.0 + jnp.exp(-z2))                                          # (Cout, 1)

    # result = (feature*g1)*g2 + feature == feature * (g1*g2 + 1): single broadcast
    # FMA epilogue; the (Cout, HW) x1 intermediate never exists.
    gate = g1 * g2 + 1.0
    o_ref[0] = (feature * gate).astype(o_ref.dtype)


# --------------------------------------------------------------------------
# Public forward: NCHW in / NCHW out (PyTorch convention).
# --------------------------------------------------------------------------
def feature_aggregation_forward(params, input_1, input_2, *, eps=1e-5,
                                out_dtype=jnp.float32):
    n, c1, h, w = input_1.shape
    c2 = input_2.shape[1]
    hw = h * w

    w1 = params['convblock']['w']                         # (Cin, Cout) matmul layout
    cin, cout = w1.shape
    assert cin == c1 + c2, "in_channels of ConvBlock should be {}".format(c1 + c2)

    # Channel-major (N, C, HW): a contiguous reshape of NCHW — no transpose passes.
    # bf16 at the boundary halves the input DMA bytes (the kernel computes in bf16
    # anyway); in a real pipeline the upstream op should emit bf16 directly.
    a = input_1.reshape(n, c1, hw).astype(jnp.bfloat16)
    b = input_2.reshape(n, c2, hw).astype(jnp.bfloat16)

    # Fold eval-mode BatchNorms into per-channel scale/bias (conv2 bias folded too).
    bn0, bn2 = params['bn0'], params['bn2']
    s1 = bn0['gamma'] * jax.lax.rsqrt(bn0['var'] + eps)
    b1 = bn0['beta'] - bn0['mean'] * s1
    s2 = bn2['gamma'] * jax.lax.rsqrt(bn2['var'] + eps)
    b2 = bn2['beta'] - bn2['mean'] * s2 + params['conv2']['b'] * s2

    # Channel-major weights (Cout, Cin); split so the concat never materializes.
    w1t = w1.T.astype(jnp.bfloat16)                       # (Cout, Cin)
    w1a, w1b = w1t[:, :c1], w1t[:, c1:]
    wc1 = params['conv1']['w'].T.astype(jnp.bfloat16)     # (Cout, Cout)
    wc2 = params['conv2']['w'].T.astype(jnp.bfloat16)     # (Cout, Cout)

    col = lambda v: v.reshape(-1, 1).astype(jnp.float32)  # per-channel columns

    # Explicit VMEM budget (double-buffered tiles + f32 intermediates) so the same
    # config ports to v7x (64 MiB physical) / v5e (16 MiB scoped default) safely.
    out_bytes = jnp.dtype(out_dtype).itemsize
    per_step = (2 * hw * (c1 + c2) * 2                    # double-buffered bf16 inputs
                + 2 * hw * cout * out_bytes               # double-buffered output
                + 4 * hw * cout * 4                       # f32 intermediates
                + (cin * cout + 2 * cout * cout) * 2 + 5 * cout * 4)
    vmem_limit = int(min(100 * 2**20, max(32 * 2**20, 2 * per_step)))

    out = pl.pallas_call(
        _fam_kernel,
        out_shape=jax.ShapeDtypeStruct((n, cout, hw), out_dtype),
        grid_spec=pltpu.PrefetchScalarGridSpec(
            num_scalar_prefetch=0,
            grid=(n,),
            in_specs=[
                pl.BlockSpec((1, c1, hw), lambda i: (i, 0, 0)),
                pl.BlockSpec((1, c2, hw), lambda i: (i, 0, 0)),
                pl.BlockSpec((cout, c1), lambda i: (0, 0)),
                pl.BlockSpec((cout, c2), lambda i: (0, 0)),
                pl.BlockSpec((cout, 1), lambda i: (0, 0)),
                pl.BlockSpec((cout, 1), lambda i: (0, 0)),
                pl.BlockSpec((cout, cout), lambda i: (0, 0)),
                pl.BlockSpec((cout, 1), lambda i: (0, 0)),
                pl.BlockSpec((cout, cout), lambda i: (0, 0)),
                pl.BlockSpec((cout, 1), lambda i: (0, 0)),
                pl.BlockSpec((cout, 1), lambda i: (0, 0)),
            ],
            out_specs=pl.BlockSpec((1, cout, hw), lambda i: (i, 0, 0)),
        ),
        compiler_params=pltpu.CompilerParams(
            dimension_semantics=("parallel",),
            vmem_limit_bytes=vmem_limit),
    )(a, b, w1a, w1b, col(s1), col(b1),
      wc1, col(params['conv1']['b']), wc2, col(s2), col(b2))

    # (N, Cout, HW) -> NCHW: contiguous reshape, no transpose.
    return out.reshape(n, cout, h, w)


# --------------------------------------------------------------------------
# Deterministic parameter init (conv1x1 weights stored matmul-style: (Cin, Cout)).
# --------------------------------------------------------------------------
def init_fam_params(key, in_channels):
    out_channels = in_channels // 4
    ks = jax.random.split(key, 7)

    def bn(k, c):
        k1, k2, k3, k4 = jax.random.split(k, 4)
        return {'gamma': 1.0 + 0.1 * jax.random.normal(k1, (c,), jnp.float32),
                'beta': 0.1 * jax.random.normal(k2, (c,), jnp.float32),
                'mean': 0.1 * jax.random.normal(k3, (c,), jnp.float32),
                'var': 1.0 + 0.1 * jax.random.uniform(k4, (c,), jnp.float32)}

    def cw(k, cin, cout):
        return jax.random.normal(k, (cin, cout), jnp.float32) / (float(cin) ** 0.5)

    return {
        'convblock': {'w': cw(ks[0], in_channels, out_channels)},   # bias=False
        'bn0': bn(ks[1], out_channels),
        'conv1': {'w': cw(ks[2], out_channels, out_channels),
                  'b': 0.01 * jax.random.normal(ks[3], (out_channels,), jnp.float32)},
        'conv2': {'w': cw(ks[4], out_channels, out_channels),
                  'b': 0.01 * jax.random.normal(ks[5], (out_channels,), jnp.float32)},
        'bn2': bn(ks[6], out_channels),
    }


# --------------------------------------------------------------------------
# Pure-JAX reference (NCHW) for a tolerance check of the fused kernel.
# --------------------------------------------------------------------------
def _fam_reference(params, input_1, input_2, eps=1e-5):
    x = jnp.concatenate([input_1, input_2], axis=1)                  # (N, Cin, H, W)
    pre = jnp.einsum('nchw,cd->ndhw', x, params['convblock']['w'])
    bn0, bn2 = params['bn0'], params['bn2']
    s1 = bn0['gamma'] / jnp.sqrt(bn0['var'] + eps)
    b1 = bn0['beta'] - bn0['mean'] * s1
    feature = jax.nn.relu(pre * s1[None, :, None, None] + b1[None, :, None, None])
    avg = feature.mean(axis=(2, 3))
    g1 = jax.nn.sigmoid(jax.nn.relu(avg @ params['conv1']['w'] + params['conv1']['b']))
    x1 = feature * g1[:, :, None, None]
    mx = x1.max(axis=(2, 3))
    s2 = bn2['gamma'] / jnp.sqrt(bn2['var'] + eps)
    b2 = bn2['beta'] - bn2['mean'] * s2
    g2 = jax.nn.sigmoid((mx @ params['conv2']['w'] + params['conv2']['b']) * s2 + b2)
    return x1 * g2[:, :, None, None] + feature


if __name__ == "__main__":
    key = jax.random.PRNGKey(0)
    kp, k1, k2 = jax.random.split(key, 3)

    N, C_half, H, W = 2, 32, 16, 16          # small shapes; in_channels = 64
    in_channels = 2 * C_half
    out_channels = in_channels // 4

    params = init_fam_params(kp, in_channels)
    input_1 = jax.random.normal(k1, (N, C_half, H, W), jnp.float32)   # NCHW
    input_2 = jax.random.normal(k2, (N, C_half, H, W), jnp.float32)   # NCHW

    fwd = jax.jit(feature_aggregation_forward)
    out = fwd(params, input_1, input_2)
    jax.block_until_ready(out)

    assert out.shape == (N, out_channels, H, W), out.shape

    # Tolerance check vs f32 reference (kernel uses bf16 MXU operands, f32 accumulate).
    ref = _fam_reference(params, input_1, input_2)
    assert jnp.allclose(out, ref, atol=0.1, rtol=0.1), float(jnp.max(jnp.abs(out - ref)))

    print("KERNEL_OK")
</pallas_src>

<mosaic_0001>
module attributes {stable_mosaic.version = 11 : i64} {
  func.func @_fam_kernel(%arg0: i32, %arg1: memref<1x32x256xbf16, #tpu.memory_space<vmem>>, %arg2: memref<1x32x256xbf16, #tpu.memory_space<vmem>>, %arg3: memref<16x32xbf16, #tpu.memory_space<vmem>>, %arg4: memref<16x32xbf16, #tpu.memory_space<vmem>>, %arg5: memref<16x1xf32, #tpu.memory_space<vmem>>, %arg6: memref<16x1xf32, #tpu.memory_space<vmem>>, %arg7: memref<16x16xbf16, #tpu.memory_space<vmem>>, %arg8: memref<16x1xf32, #tpu.memory_space<vmem>>, %arg9: memref<16x16xbf16, #tpu.memory_space<vmem>>, %arg10: memref<16x1xf32, #tpu.memory_space<vmem>>, %arg11: memref<16x1xf32, #tpu.memory_space<vmem>>, %arg12: memref<1x16x256xf32, #tpu.memory_space<vmem>>) attributes {dimension_semantics = [#tpu.dimension_semantics<parallel>], iteration_bounds = array<i64: 2>, scalar_prefetch = 0 : i64, scratch_operands = 0 : i64, tpu.core_type = #tpu.core_type<tc>, window_params = [{transform_indices = @transform_0, window_bounds = array<i64: 1, 32, 256>}, {transform_indices = @transform_1, window_bounds = array<i64: 1, 32, 256>}, {pipeline_mode = #tpu.pipeline_mode<synchronous>, transform_indices = @transform_2, window_bounds = array<i64: 16, 32>}, {pipeline_mode = #tpu.pipeline_mode<synchronous>, transform_indices = @transform_3, window_bounds = array<i64: 16, 32>}, {pipeline_mode = #tpu.pipeline_mode<synchronous>, transform_indices = @transform_4, window_bounds = array<i64: 16, 1>}, {pipeline_mode = #tpu.pipeline_mode<synchronous>, transform_indices = @transform_5, window_bounds = array<i64: 16, 1>}, {pipeline_mode = #tpu.pipeline_mode<synchronous>, transform_indices = @transform_6, window_bounds = array<i64: 16, 16>}, {pipeline_mode = #tpu.pipeline_mode<synchronous>, transform_indices = @transform_7, window_bounds = array<i64: 16, 1>}, {pipeline_mode = #tpu.pipeline_mode<synchronous>, transform_indices = @transform_8, window_bounds = array<i64: 16, 16>}, {pipeline_mode = #tpu.pipeline_mode<synchronous>, transform_indices = @transform_9, window_bounds = array<i64: 16, 1>}, {pipeline_mode = #tpu.pipeline_mode<synchronous>, transform_indices = @transform_10, window_bounds = array<i64: 16, 1>}, {transform_indices = @transform_11, window_bounds = array<i64: 1, 16, 256>}]} {
    %c0 = arith.constant 0 : index
    %c0_0 = arith.constant 0 : index
    %c0_1 = arith.constant 0 : index
    %0 = vector.load %arg1[%c0, %c0_0, %c0_1] : memref<1x32x256xbf16, #tpu.memory_space<vmem>>, vector<1x32x256xbf16>
    %1 = vector.shape_cast %0 : vector<1x32x256xbf16> to vector<32x256xbf16>
    %c0_2 = arith.constant 0 : index
    %c0_3 = arith.constant 0 : index
    %c0_4 = arith.constant 0 : index
    %2 = vector.load %arg2[%c0_2, %c0_3, %c0_4] : memref<1x32x256xbf16, #tpu.memory_space<vmem>>, vector<1x32x256xbf16>
    %3 = vector.shape_cast %2 : vector<1x32x256xbf16> to vector<32x256xbf16>
    %c0_5 = arith.constant 0 : index
    %c0_6 = arith.constant 0 : index
    %4 = vector.load %arg3[%c0_5, %c0_6] : memref<16x32xbf16, #tpu.memory_space<vmem>>, vector<16x32xbf16>
    %cst = arith.constant dense<0.000000e+00> : vector<16x256xf32>
    %5 = tpu.matmul %4, %1, %cst {dimension_numbers = #tpu.dot_dimension_numbers<[1], [0], [0], [1], [0, 0, 1, 1], [], []>} : vector<16x32xbf16>, vector<32x256xbf16>, vector<16x256xf32> -> vector<16x256xf32>
    %c0_7 = arith.constant 0 : index
    %c0_8 = arith.constant 0 : index
    %6 = vector.load %arg4[%c0_7, %c0_8] : memref<16x32xbf16, #tpu.memory_space<vmem>>, vector<16x32xbf16>
    %cst_9 = arith.constant dense<0.000000e+00> : vector<16x256xf32>
    %7 = tpu.matmul %6, %3, %cst_9 {dimension_numbers = #tpu.dot_dimension_numbers<[1], [0], [0], [1], [0, 0, 1, 1], [], []>} : vector<16x32xbf16>, vector<32x256xbf16>, vector<16x256xf32> -> vector<16x256xf32>
    %8 = arith.addf %5, %7 : vector<16x256xf32>
    %c0_10 = arith.constant 0 : index
    %c0_11 = arith.constant 0 : index
    %9 = vector.load %arg5[%c0_10, %c0_11] : memref<16x1xf32, #tpu.memory_space<vmem>>, vector<16x1xf32>
    %10 = vector.broadcast %9 : vector<16x1xf32> to vector<16x256xf32>
    %11 = arith.mulf %8, %10 : vector<16x256xf32>
    %c0_12 = arith.constant 0 : index
    %c0_13 = arith.constant 0 : index
    %12 = vector.load %arg6[%c0_12, %c0_13] : memref<16x1xf32, #tpu.memory_space<vmem>>, vector<16x1xf32>
    %13 = vector.broadcast %12 : vector<16x1xf32> to vector<16x256xf32>
    %14 = arith.addf %11, %13 : vector<16x256xf32>
    %cst_14 = arith.constant 0.000000e+00 : f32
    %15 = vector.broadcast %cst_14 : f32 to vector<16x256xf32>
    %16 = arith.maximumf %14, %15 : vector<16x256xf32>
    %cst_15 = arith.constant dense<0.000000e+00> : vector<16xf32>
    %17 = vector.multi_reduction <add>, %16, %cst_15 [1] : vector<16x256xf32> to vector<16xf32>
    %18 = vector.shape_cast %17 : vector<16xf32> to vector<16x1xf32>
    %cst_16 = arith.constant dense<0xFF800000> : vector<16xf32>
    %19 = vector.multi_reduction <maximumf>, %16, %cst_16 [1] : vector<16x256xf32> to vector<16xf32>
    %20 = vector.shape_cast %19 : vector<16xf32> to vector<16x1xf32>
    %cst_17 = arith.constant 3.906250e-03 : f32
    %21 = vector.broadcast %cst_17 : f32 to vector<16x1xf32>
    %22 = arith.mulf %18, %21 : vector<16x1xf32>
    %23 = arith.truncf %22 : vector<16x1xf32> to vector<16x1xbf16>
    %c0_18 = arith.constant 0 : index
    %c0_19 = arith.constant 0 : index
    %24 = vector.load %arg7[%c0_18, %c0_19] : memref<16x16xbf16, #tpu.memory_space<vmem>>, vector<16x16xbf16>
    %cst_20 = arith.constant dense<0.000000e+00> : vector<16x1xf32>
    %25 = tpu.matmul %24, %23, %cst_20 {dimension_numbers = #tpu.dot_dimension_numbers<[1], [0], [0], [1], [0, 0, 1, 1], [], []>} : vector<16x16xbf16>, vector<16x1xbf16>, vector<16x1xf32> -> vector<16x1xf32>
    %c0_21 = arith.constant 0 : index
    %c0_22 = arith.constant 0 : index
    %26 = vector.load %arg8[%c0_21, %c0_22] : memref<16x1xf32, #tpu.memory_space<vmem>>, vector<16x1xf32>
    %27 = arith.addf %25, %26 : vector<16x1xf32>
    %cst_23 = arith.constant 0.000000e+00 : f32
    %28 = vector.broadcast %cst_23 : f32 to vector<16x1xf32>
    %29 = arith.maximumf %27, %28 : vector<16x1xf32>
    %cst_24 = arith.constant 0.000000e+00 : f32
    %30 = vector.broadcast %cst_24 : f32 to vector<16x1xf32>
    %31 = arith.subf %30, %29 : vector<16x1xf32>
    %32 = math.exp %31 : vector<16x1xf32>
    %cst_25 = arith.constant 1.000000e+00 : f32
    %33 = vector.broadcast %cst_25 : f32 to vector<16x1xf32>
    %34 = arith.addf %33, %32 : vector<16x1xf32>
    %cst_26 = arith.constant 1.000000e+00 : f32
    %35 = vector.broadcast %cst_26 : f32 to vector<16x1xf32>
    %36 = arith.divf %35, %34 : vector<16x1xf32>
    %37 = arith.mulf %20, %36 : vector<16x1xf32>
    %38 = arith.truncf %37 : vector<16x1xf32> to vector<16x1xbf16>
    %c0_27 = arith.constant 0 : index
    %c0_28 = arith.constant 0 : index
    %39 = vector.load %arg9[%c0_27, %c0_28] : memref<16x16xbf16, #tpu.memory_space<vmem>>, vector<16x16xbf16>
    %cst_29 = arith.constant dense<0.000000e+00> : vector<16x1xf32>
    %40 = tpu.matmul %39, %38, %cst_29 {dimension_numbers = #tpu.dot_dimension_numbers<[1], [0], [0], [1], [0, 0, 1, 1], [], []>} : vector<16x16xbf16>, vector<16x1xbf16>, vector<16x1xf32> -> vector<16x1xf32>
    %c0_30 = arith.constant 0 : index
    %c0_31 = arith.constant 0 : index
    %41 = vector.load %arg10[%c0_30, %c0_31] : memref<16x1xf32, #tpu.memory_space<vmem>>, vector<16x1xf32>
    %42 = arith.mulf %40, %41 : vector<16x1xf32>
    %c0_32 = arith.constant 0 : index
    %c0_33 = arith.constant 0 : index
    %43 = vector.load %arg11[%c0_32, %c0_33] : memref<16x1xf32, #tpu.memory_space<vmem>>, vector<16x1xf32>
    %44 = arith.addf %42, %43 : vector<16x1xf32>
    %cst_34 = arith.constant 0.000000e+00 : f32
    %45 = vector.broadcast %cst_34 : f32 to vector<16x1xf32>
    %46 = arith.subf %45, %44 : vector<16x1xf32>
    %47 = math.exp %46 : vector<16x1xf32>
    %cst_35 = arith.constant 1.000000e+00 : f32
    %48 = vector.broadcast %cst_35 : f32 to vector<16x1xf32>
    %49 = arith.addf %48, %47 : vector<16x1xf32>
    %cst_36 = arith.constant 1.000000e+00 : f32
    %50 = vector.broadcast %cst_36 : f32 to vector<16x1xf32>
    %51 = arith.divf %50, %49 : vector<16x1xf32>
    %52 = arith.mulf %36, %51 : vector<16x1xf32>
    %cst_37 = arith.constant 1.000000e+00 : f32
    %53 = vector.broadcast %cst_37 : f32 to vector<16x1xf32>
    %54 = arith.addf %52, %53 : vector<16x1xf32>
    %55 = vector.broadcast %54 : vector<16x1xf32> to vector<16x256xf32>
    %56 = arith.mulf %16, %55 : vector<16x256xf32>
    %c0_38 = arith.constant 0 : index
    %c0_39 = arith.constant 0 : index
    %c0_40 = arith.constant 0 : index
    %57 = vector.load %arg12[%c0_38, %c0_39, %c0_40] : memref<1x16x256xf32, #tpu.memory_space<vmem>>, vector<1x16x256xf32>
    %58 = vector.shape_cast %57 : vector<1x16x256xf32> to vector<16x256xf32>
    %59 = vector.shape_cast %56 : vector<16x256xf32> to vector<1x16x256xf32>
    tpu.vector_store %arg12[%c0_38, %c0_39, %c0_40], %59 {strides = array<i32>} : memref<1x16x256xf32, #tpu.memory_space<vmem>>, vector<1x16x256xf32>,
    return
  }
  func.func @transform_0(%arg0: i32) -> (i32, i32, i32) {
    %c0_i32 = arith.constant 0 : i32
    %c0_i32_0 = arith.constant 0 : i32
    %c0_i32_1 = arith.constant 0 : i32
    return %arg0, %c0_i32, %c0_i32_0 : i32, i32, i32
  }
  func.func @transform_1(%arg0: i32) -> (i32, i32, i32) {
    %c0_i32 = arith.constant 0 : i32
    %c0_i32_0 = arith.constant 0 : i32
    %c0_i32_1 = arith.constant 0 : i32
    return %arg0, %c0_i32, %c0_i32_0 : i32, i32, i32
  }
  func.func @transform_2(%arg0: i32) -> (i32, i32) {
    %c0_i32 = arith.constant 0 : i32
    %c0_i32_0 = arith.constant 0 : i32
    %c0_i32_1 = arith.constant 0 : i32
    return %c0_i32, %c0_i32_0 : i32, i32
  }
  func.func @transform_3(%arg0: i32) -> (i32, i32) {
    %c0_i32 = arith.constant 0 : i32
    %c0_i32_0 = arith.constant 0 : i32
    %c0_i32_1 = arith.constant 0 : i32
    return %c0_i32, %c0_i32_0 : i32, i32
  }
  func.func @transform_4(%arg0: i32) -> (i32, i32) {
    %c0_i32 = arith.constant 0 : i32
    %c0_i32_0 = arith.constant 0 : i32
    %c0_i32_1 = arith.constant 0 : i32
    return %c0_i32, %c0_i32_0 : i32, i32
  }
  func.func @transform_5(%arg0: i32) -> (i32, i32) {
    %c0_i32 = arith.constant 0 : i32
    %c0_i32_0 = arith.constant 0 : i32
    %c0_i32_1 = arith.constant 0 : i32
    return %c0_i32, %c0_i32_0 : i32, i32
  }
  func.func @transform_6(%arg0: i32) -> (i32, i32) {
    %c0_i32 = arith.constant 0 : i32
    %c0_i32_0 = arith.constant 0 : i32
    %c0_i32_1 = arith.constant 0 : i32
    return %c0_i32, %c0_i32_0 : i32, i32
  }
  func.func @transform_7(%arg0: i32) -> (i32, i32) {
    %c0_i32 = arith.constant 0 : i32
    %c0_i32_0 = arith.constant 0 : i32
    %c0_i32_1 = arith.constant 0 : i32
    return %c0_i32, %c0_i32_0 : i32, i32
  }
  func.func @transform_8(%arg0: i32) -> (i32, i32) {
    %c0_i32 = arith.constant 0 : i32
    %c0_i32_0 = arith.constant 0 : i32
    %c0_i32_1 = arith.constant 0 : i32
    return %c0_i32, %c0_i32_0 : i32, i32
  }
  func.func @transform_9(%arg0: i32) -> (i32, i32) {
    %c0_i32 = arith.constant 0 : i32
    %c0_i32_0 = arith.constant 0 : i32
    %c0_i32_1 = arith.constant 0 : i32
    return %c0_i32, %c0_i32_0 : i32, i32
  }
  func.func @transform_10(%arg0: i32) -> (i32, i32) {
    %c0_i32 = arith.constant 0 : i32
    %c0_i32_0 = arith.constant 0 : i32
    %c0_i32_1 = arith.constant 0 : i32
    return %c0_i32, %c0_i32_0 : i32, i32
  }
  func.func @transform_11(%arg0: i32) -> (i32, i32, i32) {
    %c0_i32 = arith.constant 0 : i32
    %c0_i32_0 = arith.constant 0 : i32
    %c0_i32_1 = arith.constant 0 : i32
    return %arg0, %c0_i32, %c0_i32_0 : i32, i32, i32
  }
}

</mosaic_0001>

<bundles_post_ra>
// kernel: feature_aggregation_forward.1
= control target key start
LH: loop header
LB: loop body
LE: loop exit
PB: predicated region body
PF: predicated region fallthrough
CT: control target
= control target key end

     0   :  { %s992_s17 = smov 0   ;;  %s1081_s0 = inlined_call_operand.vmem [shape: bf16[2,32,256], index: 0, kind: input, shape index: {}]   ;;  %s1082_s1 = inlined_call_operand.vmem [shape: bf16[2,32,256], index: 1, kind: input, shape index: {}]   ;;  %s1083_s2 = inlined_call_operand.vmem [shape: bf16[16,32], index: 2, kind: input, shape index: {}]   ;;  %s1084_s3 = inlined_call_operand.vmem [shape: bf16[16,32], index: 3, kind: input, shape index: {}]   ;;  %s1085_s4 = inlined_call_operand.vmem [shape: f32[16,1], index: 4, kind: input, shape index: {}]   ;;  %s1086_s5 = inlined_call_operand.vmem [shape: f32[16,1], index: 5, kind: input, shape index: {}]   ;;  %s1087_s6 = inlined_call_operand.vmem [shape: bf16[16,16], index: 6, kind: input, shape index: {}]   ;;  %s1088_s7 = inlined_call_operand.vmem [shape: f32[16,1], index: 7, kind: input, shape index: {}]   ;;  %s1089_s8 = inlined_call_operand.vmem [shape: bf16[16,16], index: 8, kind: input, shape index: {}]   ;;  %s1090_s9 = inlined_call_operand.vmem [shape: f32[16,1], index: 9, kind: input, shape index: {}]   ;;  %s1091_s10 = inlined_call_operand.vmem [shape: f32[16,1], index: 10, kind: input, shape index: {}]   ;;  %s1092_s11 = inlined_call_operand.vmem [shape: f32[2,16,256], index: 11, kind: output, shape index: {}]  }
   0x1 LB: > { %s813_s18 = sadd.s32 4294967295, %s929_s17   ;;  %p817_p0 = scmp.ge.s32.totalorder %s929_s17, 1  ;;  %s929_s17 = sphi %s992_s17, %s21_s17  }
   0x2   : > { %p347_p1 = scmp.lt.s32.totalorder %s929_s17, 3 }
   0x4   : > { %p348_p2 = pnand %p817_p0, %p347_p1 }
   0x5   : > { %p392_p3 = scmp.lt.s32.totalorder (!%p348_p2), %s813_s18, 1 }
   0x6   : > { %351 = sbr.rel (%p348_p2) target bundleno = 741 (0x2e5), region = 64 }
   0xb   : > { %v533_v0 = vld [vmem:[%s1085_s4] sm:$0xff]  ;;  %v931_v1 = vmov 0   ;;  %s1094_s18 = smov (!%p392_p3, %s813_s18), 1  ;;  %v534_v6 = vld [vmem:[%s1085_s4 + $0x8] sm:$0xff]  ;;  %vm445_vm0 = vcmask 261120   ;;  %vm593_vm1 = vcmask 130048  }
   0xc   : > { %904 = vset.pattern.permute.xlu0 %v931_v1  ;;  %905 = vset.pattern.permute.xlu1 %v931_v1  ;;  %v549_v2 = vld [vmem:[%s1086_s5] sm:$0xff]  ;;  %s1006_s23 = sshll.u32 %s1094_s18, 5  ;;  %v550_v11 = vld [vmem:[%s1086_s5 + $0x8] sm:$0xff] }
   0xd   : > { %537 = vperm.xlu0 %904, %v533_v0   ;;  %553 = vperm.xlu1 %905, %v549_v2   ;;  %s401_s26 = scalar_lea.vmem %s1082_s1, %s1006_s23  ;;  %s396_s29 = scalar_lea.vmem %s1081_s0, %s1006_s23  ;;  %v892_v29 = vld [vmem:[%s1084_s3] sm:$0xff] }
   0xe   : > { %906 = vset.pattern.permute.xlu2 %v931_v1  ;;  %v838_v3 = vld [vmem:[%s401_s26 + $0x10] sm:$0xf]  ;;  %v890_v4 = vld [vmem:[%s401_s26 + $0x14] sm:$0xf0]  ;;  %v889_v5 = vld [vmem:[%s401_s26 + $0x14] sm:$0xf]  ;;  %s406_s21 = scalar_lea.vmem %s1092_s11, %s1006_s23 }
   0xf   : > { %v839_v7 = vor.u32 %v890_v4, %v838_v3  ;;  %v840_v8 = vld [vmem:[%s401_s26 + $0x18] sm:$0xf0]  ;;  %v860_v9 = vld [vmem:[%s396_s29 + $0x10] sm:$0xf]  ;;  %v886_v10 = vld [vmem:[%s396_s29 + $0x14] sm:$0xf0] }
  0x10   : > { %v843_v12 = vor.u32 %v889_v5, %v840_v8  ;;  %v861_v13 = vor.u32 %v886_v10, %v860_v9  ;;  %v885_v14 = vld [vmem:[%s396_s29 + $0x14] sm:$0xf]  ;;  %v862_v15 = vld [vmem:[%s396_s29 + $0x18] sm:$0xf0]  ;;  %v830_v16 = vld [vmem:[%s401_s26] sm:$0xf] }
  0x11   : > { %455 = vmatpush.bf16.msra.mxu0 %v839_v7  ;;  %v865_v17 = vor.u32 %v885_v14, %v862_v15  ;;  %v888_v18 = vld [vmem:[%s401_s26 + $0x4] sm:$0xf0]  ;;  %v887_v19 = vld [vmem:[%s401_s26 + $0x4] sm:$0xf]  ;;  %v832_v20 = vld [vmem:[%s401_s26 + $0x8] sm:$0xf0] }
  0x12   : > { %469 = vmatpush.bf16.msra.mxu1 %v843_v12  ;;  %511 = vmatpush.bf16.msra.mxu2 %v861_v13  ;;  %v831_v21 = vor.u32 %v888_v18, %v830_v16  ;;  %v835_v22 = vor.u32 %v887_v19, %v832_v20  ;;  %v852_v23 = vld [vmem:[%s396_s29] sm:$0xf]  ;;  %v884_v24 = vld [vmem:[%s396_s29 + $0x4] sm:$0xf0]  ;;  %v883_v25 = vld [vmem:[%s396_s29 + $0x4] sm:$0xf] }
  0x13   : > { %525 = vmatpush.bf16.msra.mxu3 %v865_v17  ;;  %v853_v26 = vor.u32 %v884_v24, %v852_v23  ;;  %v854_v27 = vld [vmem:[%s396_s29 + $0x8] sm:$0xf0]  ;;  %v891_v30 = vld [vmem:[%s1083_s2] sm:$0xff] }
  0x14   : > { %v857_v28 = vor.u32 %v883_v25, %v854_v27  ;;  %v893_v4 = vld [vmem:[%s1087_s6] sm:$0xff]  ;;  %v587_v10 = vld [vmem:[%s1088_s7 + $0x8] sm:$0xff] }
  0x15   : > { %542 = vperm.xlu0 %904, %v534_v6   ;;  %558 = vperm.xlu1 %905, %v550_v11   ;;  %v586_v5 = vld [vmem:[%s1088_s7] sm:$0xff] }
  0x16   : > { %456 = vmatpush.bf16.msra.mxu0 %v831_v21  ;;  %470 = vmatpush.bf16.msra.mxu1 %v835_v22 }
  0x17   : > { %512 = vmatpush.bf16.msra.mxu2 %v853_v26  ;;  %526 = vmatpush.bf16.msra.mxu3 %v857_v28 }
  0x19   : > { %844 = vmatmul.msk.bf16.vlgmr.msra.gmra.mxu0 %vm445_vm0, %v892_v29  ;;  %845 = vmatmul.msk.bf16.vlgmr.msra.gmra.mxu1 %vm445_vm0, %v892_v29 }
  0x1a   : > { %866 = vmatmul.msk.bf16.vlgmr.msra.gmra.mxu2 %vm445_vm0, %v891_v30  ;;  %867 = vmatmul.msk.bf16.vlgmr.msra.gmra.mxu3 %vm445_vm0, %v891_v30 }
  0x7f   : > { %v538_v33 = vpop.permute.xlu0 %537  ;;  %v554_v37 = vpop.permute.xlu1 %553 }
  0x87   : > { %v543_v50 = vpop.permute.xlu0 %542  ;;  %v559_v55 = vpop.permute.xlu1 %558 }
  0x96   : > { %v458_v31 = vpop.f32.mrf.mxu0  ;;  %v472_v32 = vpop.f32.mrf.mxu1 }
  0x9d   : > { %v514_v34 = vpop.f32.mrf.mxu2  ;;  %v528_v36 = vpop.f32.mrf.mxu3 }
  0x9e   : > { %v515_v35 = vadd.f32 %v514_v34, %v458_v31  ;;  %v529_v38 = vadd.f32 %v528_v36, %v472_v32  ;;  %v460_v45 = vpop.f32.mrf.mxu0  ;;  %v474_v47 = vpop.f32.mrf.mxu1 }
  0xa0   : > { %v545_v39 = vmul.f32 %v538_v33, %v515_v35  ;;  %v546_v40 = vmul.f32 %v538_v33, %v529_v38 }
  0xa2   : > { %v561_v41 = vadd.f32 %v554_v37, %v545_v39  ;;  %v562_v42 = vadd.f32 %v554_v37, %v546_v40 }
  0xa4   : > { %v1028_v43 = vmax.f32 %v561_v41, 0.0  ;;  %v1030_v44 = vmax.f32 %v562_v42, 0.0 }
  0xa5   : > { %v516_v46 = vpop.f32.mrf.mxu2  ;;  %v530_v49 = vpop.f32.mrf.mxu3 }
  0xa6   : > { %v517_v48 = vadd.f32 %v516_v46, %v460_v45  ;;  %v531_v51 = vadd.f32 %v530_v49, %v474_v47  ;;  %v575_v52 = vmax.f32 %v1028_v43, %v1030_v44  ;;  %v569_v53 = vadd.f32 %v1030_v44, %v1028_v43  ;;  %v678_v49 = vld [vmem:[%s1090_s9] sm:$0xff] }
  0xa8   : > { %v547_v54 = vmul.f32 %v543_v50, %v517_v48  ;;  %v548_v56 = vmul.f32 %v543_v50, %v531_v51  ;;  %576 = vmax.xlane.f32.xlu0 %v575_v52  ;;  %570 = vadd.xlane.f32.xlu2 %v569_v53  ;;  %v894_v48 = vld [vmem:[%s1089_s8] sm:$0xff] }
  0xa9   : > { %v682_v51 = vld [vmem:[%s1091_s10] sm:$0xff] }
  0xaa   : > { %v563_v57 = vadd.f32 %v559_v55, %v547_v54  ;;  %v564_v58 = vadd.f32 %v559_v55, %v548_v56  ;;  %v679_v55 = vld [vmem:[%s1090_s9 + $0x8] sm:$0xff] }
  0xac   : > { %v1036_v59 = vmax.f32 %v563_v57, 0.0  ;;  %v1038_v60 = vmax.f32 %v564_v58, 0.0  ;;  %v683_v58 = vld [vmem:[%s1091_s10 + $0x8] sm:$0xff] }
  0xae   : > { %v578_v61 = vmax.f32 %v1036_v59, %v1038_v60  ;;  %v572_v62 = vadd.f32 %v1038_v60, %v1036_v59 }
  0xb0   : > { %579 = vmax.xlane.f32.xlu1 %v578_v61  ;;  %573 = vadd.xlane.f32.xlu2 %v572_v62 }
 0x11b   : > { %v571_v63 = vpop.xlane.xlu2 %570  ;;  %v577_v40 = vpop.xlane.xlu0 %576 }
 0x11c   : > { %v581_v1 = vmul.f32 0.00390625, %v571_v63 }
 0x123   : > { %v574_v0 = vpop.xlane.xlu2 %573  ;;  %v580_v41 = vpop.xlane.xlu1 %579 }
 0x124   : > { %v582_v2 = vmul.f32 0.00390625, %v574_v0 }
 0x126   : > { %v583_v3 = vpack.c.bf16 %v582_v2, %v581_v1 }
 0x128   : > { %604 = vmatpush.bf16.msrb.mxu0 %v583_v3 }
 0x12b   : > { %872 = vmatmul.msk.bf16.vlgmr.msrb.gmra.mxu0 %vm593_vm1, %v893_v4 }
 0x1a8   : > { %v606_v6 = vpop.f32.mrf.mxu0 }
 0x1a9   : > { %v607_v7 = vadd.f32 %v606_v6, %v586_v5 }
 0x1ab   : > { %v611_v8 = vmax.f32 %v607_v7, 0.0 }
 0x1ad   : > { %v613_v9 = vsub.f32 0.0, %v611_v8 }
 0x1af   : > { %v615_v11 = vmul.f32 1.442695, %v613_v9 }
 0x1b0   : > { %v608_v12 = vpop.f32.mrf.mxu0 }
 0x1b1   : > { %907 = vpow2.f32 %v615_v11  ;;  %v609_v13 = vadd.f32 %v608_v12, %v587_v10 }
 0x1b3   : > { %v612_v14 = vmax.f32 %v609_v13, 0.0 }
 0x1b5   : > { %v614_v15 = vsub.f32 0.0, %v612_v14 }
 0x1b7   : > { %v908_v16 = vpop.eup %907  ;;  %v617_v17 = vmul.f32 1.442695, %v614_v15 }
 0x1b8   : > { %v619_v18 = vadd.f32 1.0, %v908_v16 }
 0x1b9   : > { %909 = vpow2.f32 %v617_v17 }
 0x1ba   : > { %911 = vrcp.f32 %v619_v18  ;;  %v632_v28 = vand.u32 2147483648, %v619_v18  ;;  %vm626_vm3 = vweird.f32 %v619_v18  ;;  %v630_v29 = vand.u32 2147483647, %v619_v18 }
 0x1bc   : > { %v633_v35 = vor.u32 1.1754944e-38, %v632_v28  ;;  %vm631_vm6 = vcmp.eq.f32.partialorder %v630_v29, 8.507059e+37 }
 0x1bf   : > { %v910_v19 = vpop.eup %909 }
 0x1c0   : > { %v912_v20 = vpop.eup %911  ;;  %v620_v21 = vadd.f32 1.0, %v910_v19 }
 0x1c1   : > { %v622_v22 = vmul.f32 %v912_v20, %v619_v18  ;;  %vm627_vm2 = vweird.f32 %v912_v20 }
 0x1c2   : > { %913 = vrcp.f32 %v620_v21  ;;  %vm628_vm4 = vmor %vm626_vm3, %vm627_vm2  ;;  %v647_v31 = vand.u32 2147483648, %v620_v21  ;;  %v645_v34 = vand.u32 2147483647, %v620_v21  ;;  %vm641_vm7 = vweird.f32 %v620_v21 }
 0x1c3   : > { %v623_v23 = vsub.f32 1.0, %v622_v22 }
 0x1c4   : > { %v648_v38 = vor.u32 1.1754944e-38, %v647_v31  ;;  %vm646_vm9 = vcmp.eq.f32.partialorder %v645_v34, 8.507059e+37 }
 0x1c5   : > { %v624_v24 = vmul.f32 %v912_v20, %v623_v23 }
 0x1c7   : > { %v625_v26 = vadd.f32 %v912_v20, %v624_v24 }
 0x1c8   : > { %v914_v25 = vpop.eup %913 }
 0x1c9   : > { %v637_v27 = vmul.f32 %v914_v25, %v620_v21  ;;  %v629_v32 = vsel %vm628_vm4, %v912_v20, %v625_v26  ;;  %vm642_vm5 = vweird.f32 %v914_v25 }
 0x1ca   : > { %v634_v37 = vsel %vm631_vm6, %v633_v35, %v629_v32  ;;  %vm643_vm8 = vmor %vm641_vm7, %vm642_vm5 }
 0x1cb   : > { %v638_v30 = vsub.f32 1.0, %v637_v27  ;;  %v651_v45 = vmul.f32 %v634_v37, %v577_v40 }
 0x1cd   : > { %v639_v33 = vmul.f32 %v914_v25, %v638_v30 }
 0x1cf   : > { %v640_v36 = vadd.f32 %v914_v25, %v639_v33 }
 0x1d1   : > { %v644_v39 = vsel %vm643_vm8, %v914_v25, %v640_v36 }
 0x1d2   : > { %v649_v42 = vsel %vm646_vm9, %v648_v38, %v644_v39 }
 0x1d3   : > { %v652_v46 = vmul.f32 %v649_v42, %v580_v41 }
 0x1d5   : > { %v653_v47 = vpack.c.bf16 %v652_v46, %v651_v45 }
 0x1d7   : > { %671 = vmatpush.bf16.msrb.mxu1 %v653_v47 }
 0x1da   : > { %877 = vmatmul.msk.bf16.vlgmr.msrb.gmra.mxu1 %vm593_vm1, %v894_v48 }
 0x257   : > { %v673_v50 = vpop.f32.mrf.mxu1 }
 0x258   : > { %v680_v52 = vmul.f32 %v678_v49, %v673_v50 }
 0x25a   : > { %v684_v53 = vadd.f32 %v682_v51, %v680_v52 }
 0x25c   : > { %v686_v54 = vsub.f32 0.0, %v684_v53 }
 0x25e   : > { %v688_v56 = vmul.f32 1.442695, %v686_v54 }
 0x25f   : > { %v675_v57 = vpop.f32.mrf.mxu1 }
 0x260   : > { %915 = vpow2.f32 %v688_v56  ;;  %v681_v61 = vmul.f32 %v679_v55, %v675_v57 }
 0x262   : > { %v685_v62 = vadd.f32 %v683_v58, %v681_v61 }
 0x264   : > { %v687_v63 = vsub.f32 0.0, %v685_v62 }
 0x266   : > { %v916_v0 = vpop.eup %915  ;;  %v690_v1 = vmul.f32 1.442695, %v687_v63 }
 0x267   : > { %v692_v2 = vadd.f32 1.0, %v916_v0 }
 0x268   : > { %917 = vpow2.f32 %v690_v1 }
 0x269   : > { %919 = vrcp.f32 %v692_v2  ;;  %v705_v8 = vand.u32 2147483648, %v692_v2  ;;  %v703_v10 = vand.u32 2147483647, %v692_v2  ;;  %vm699_vm11 = vweird.f32 %v692_v2 }
 0x26b   : > { %v706_v13 = vor.u32 1.1754944e-38, %v705_v8  ;;  %vm704_vm13 = vcmp.eq.f32.partialorder %v703_v10, 8.507059e+37 }
 0x26e   : > { %v918_v3 = vpop.eup %917 }
 0x26f   : > { %v920_v4 = vpop.eup %919  ;;  %v693_v5 = vadd.f32 1.0, %v918_v3 }
 0x270   : > { %v695_v6 = vmul.f32 %v920_v4, %v692_v2  ;;  %vm700_vm10 = vweird.f32 %v920_v4 }
 0x271   : > { %921 = vrcp.f32 %v693_v5  ;;  %vm701_vm12 = vmor %vm699_vm11, %vm700_vm10  ;;  %v720_v19 = vand.u32 2147483648, %v693_v5  ;;  %v718_v22 = vand.u32 2147483647, %v693_v5  ;;  %vm714_vm15 = vweird.f32 %v693_v5 }
 0x272   : > { %v696_v7 = vsub.f32 1.0, %v695_v6 }
 0x273   : > { %v721_v24 = vor.u32 1.1754944e-38, %v720_v19  ;;  %vm719_vm1 = vcmp.eq.f32.partialorder %v718_v22, 8.507059e+37 }
 0x274   : > { %v697_v9 = vmul.f32 %v920_v4, %v696_v7 }
 0x276   : > { %v698_v11 = vadd.f32 %v920_v4, %v697_v9 }
 0x277   : > { %v922_v12 = vpop.eup %921 }
 0x278   : > { %v702_v14 = vsel %vm701_vm12, %v920_v4, %v698_v11  ;;  %v710_v15 = vmul.f32 %v922_v12, %v693_v5  ;;  %vm715_vm14 = vweird.f32 %v922_v12 }
 0x279   : > { %v707_v16 = vsel %vm704_vm13, %v706_v13, %v702_v14  ;;  %vm716_vm0 = vmor %vm714_vm15, %vm715_vm14 }
 0x27a   : > { %v724_v17 = vmul.f32 %v707_v16, %v634_v37  ;;  %v711_v18 = vsub.f32 1.0, %v710_v15 }
 0x27c   : > { %v726_v20 = vadd.f32 1.0, %v724_v17  ;;  %v712_v21 = vmul.f32 %v922_v12, %v711_v18 }
 0x27e   : > { %730 = vperm.xlu2 %906, %v726_v20   ;;  %v713_v23 = vadd.f32 %v922_v12, %v712_v21 }
 0x280   : > { %v717_v25 = vsel %vm716_vm0, %v922_v12, %v713_v23 }
 0x281   : > { %v722_v26 = vsel %vm719_vm1, %v721_v24, %v717_v25 }
 0x282   : > { %v725_v27 = vmul.f32 %v722_v26, %v649_v42 }
 0x284   : > { %v727_v28 = vadd.f32 1.0, %v725_v27 }
 0x286   : > { %735 = vperm.xlu2 %906, %v727_v28  }
 0x2d8   : > { %v731_v29 = vpop.permute.xlu2 %730 }
 0x2d9   : > { %v738_v30 = vmul.f32 %v731_v29, %v1028_v43  ;;  %v739_v31 = vmul.f32 %v731_v29, %v1030_v44 }
 0x2db   : > { %742 = vst [vmem:[%s406_s21] sm:$0xff] %v738_v30 }
 0x2dc   : > { %743 = vst [vmem:[%s406_s21 + $0x8] sm:$0xff] %v739_v31 }
 0x2e0   : > { %v736_v32 = vpop.permute.xlu2 %735 }
 0x2e1   : > { %v740_v33 = vmul.f32 %v736_v32, %v1036_v59  ;;  %v741_v34 = vmul.f32 %v736_v32, %v1038_v60 }
 0x2e3   : > { %744 = vst [vmem:[%s406_s21 + $0x10] sm:$0xff] %v740_v33 }
 0x2e4   : > { %745 = vst [vmem:[%s406_s21 + $0x18] sm:$0xff] %v741_v34 }
 0x2e5 PF: > { %s21_s17 = sadd.s32 1, %s929_s17  }
 0x2e6   : > { %p18_p4 = scmp.ge.s32.totalorder %s21_s17, 4  }
 0x2e8   :  { %20 = sbr.rel (!%p18_p4) target bundleno = 1 (0x1), region = 97 }

</bundles_post_ra>
